<compile_context>
chip_gen: v6e
topology: v6e:2x2x1
jax: 0.10.0
libtpu: 0.0.40
codegen_flags: <defaults>
</compile_context>

<pallas_src>
import functools

import jax
import jax.numpy as jnp
from jax import lax
from jax.experimental import pallas as pl
from jax.experimental.pallas import tpu as pltpu


# ----------------------------------------------------------------------------
# Pallas kernel: whole forward (all T timesteps) in one invocation.
# ----------------------------------------------------------------------------
def beenet_kernel(states_ref, mask_ref, w32_ref, wwide_ref, q_ref,
                  *, T, N, NP, F, H, A):
    # ---- unpack the two packed weight buffers (static slices) ----
    # w32_ref  : [F+1+NP+H+1, H]  rows = [w1; b1; h0; whead_pad; bhead_pad]
    # wwide_ref: [H+1, 13H]       rows 0..H-1 = [wih_e | wcom@wih_c | whh | wcom]
    #                             row  H      = [blstm | zeros]
    w1 = w32_ref[0:F, :]                                   # [F, H]
    b1 = w32_ref[F:F + 1, :]                               # [1, H]
    h0 = w32_ref[F + 1:F + 1 + NP, :]                      # [NP, H]
    whead = w32_ref[F + 1 + NP:F + 1 + NP + H, :]          # [H, H] (A+1 lanes live)
    bhead = w32_ref[F + 1 + NP + H:F + 2 + NP + H, :]      # [1, H]

    wih_e = wwide_ref[0:H, 0:4 * H]                        # [H, 4H]
    w_rec = wwide_ref[0:H, 4 * H:13 * H]                   # [H, 9H]
    blstm = wwide_ref[H:H + 1, 0:4 * H]                    # [1, 4H]

    # ---- batched, non-recurrent pre-pass (off the serial critical path) ----
    x = states_ref[...]                                    # [T*NP, F]
    eyes = jnp.maximum(
        jnp.dot(x, w1, preferred_element_type=jnp.float32) + b1, 0.0)
    # eyes -> gate pre-activations for all T at once, blstm folded in.
    eg_all = jnp.dot(eyes, wih_e,
                     preferred_element_type=jnp.float32) + blstm   # [T*NP, 4H]

    cm = mask_ref[...]                                     # [T*NP, NP]
    m_all = jnp.sum(cm * cm, axis=-1, keepdims=True)       # [T*NP, 1]

    neg_n = jnp.float32(-float(N))

    # ---- serial recurrence: one MXU push per step ----
    ht = h0
    ct = jnp.zeros_like(ht)
    hts = []
    for l in range(T):
        # fused = ht @ [wcom@wih_c | whh | wcom]  (single dot per step)
        fused = jnp.dot(ht, w_rec, preferred_element_type=jnp.float32)  # [NP, 9H]
        gates = eg_all[l * NP:(l + 1) * NP, :] + fused[:, 4 * H:8 * H]
        if l > 0:
            # Exact rank-1 closed form of the comm bmm chain (communication is
            # always a masked row-broadcast of com_out = ht @ wcom; zero at l=0):
            #   comm_vec @ wih_c = (-N*||com_out||^2*||mask_row||^2) * (ht@wcom@wih_c)
            com_out = fused[:, 8 * H:9 * H]                             # [NP, H]
            s = jnp.sum(com_out * com_out, axis=-1, keepdims=True)      # [NP, 1]
            c = neg_n * s * m_all[l * NP:(l + 1) * NP, :]               # [NP, 1]
            gates = gates + c * fused[:, 0:4 * H]

        # One full-vreg sigmoid; tanh only on the g block (gate order i,f,g,o).
        sg = jax.nn.sigmoid(gates)
        g_g = jnp.tanh(gates[:, 2 * H:3 * H])
        ct = sg[:, H:2 * H] * ct + sg[:, 0:H] * g_g
        ht = sg[:, 3 * H:4 * H] * jnp.tanh(ct)
        hts.append(ht)

        # TODO(synk): the detach() truncation branch is autograd-only and a
        # forward no-op; omitted here.

    # ---- batched post-pass: fused advantage/value heads + dueling Q ----
    hts_all = jnp.concatenate(hts, axis=0)                 # [T*NP, H]
    head = jnp.dot(hts_all, whead,
                   preferred_element_type=jnp.float32) + bhead
    adv = head[:, 0:A]
    val = head[:, A:A + 1]
    # Single lane-batched store of the whole output (no per-step vst.msk).
    q_ref[...] = val + adv - jnp.mean(adv, axis=-1, keepdims=True)


# ----------------------------------------------------------------------------
# Wrapper
# ----------------------------------------------------------------------------
@functools.partial(jax.jit, static_argnames=("hidden_dim", "action_space"))
def beenet_forward(states, comm_mask, params, *, hidden_dim, action_space):
    T, N, F = states.shape
    H, A = hidden_dim, action_space
    assert A + 1 <= H, "head packing assumes A+1 <= H"

    # Pad the agent dim to the 8-sublane grain; padded agents see zero inputs
    # / zero mask rows / zero h0 and never influence real agents.
    NP = ((N + 7) // 8) * 8
    pad = NP - N
    TNP = T * NP
    states_flat = jnp.pad(states, ((0, 0), (0, pad), (0, 0))).reshape(TNP, F)
    mask_flat = jnp.pad(comm_mask, ((0, 0), (0, pad), (0, pad))).reshape(TNP, NP)
    h0_p = jnp.pad(params["h0"], ((0, pad), (0, 0)))

    # Split W_ih into eyes/comm halves; fold wcom into the comm half so the
    # whole ht-dependent path is one matmul per step.
    wih = params["wih"]
    wih_e, wih_c = wih[:H, :], wih[H:, :]
    wcom_ihc = params["wcom"] @ wih_c                              # [H, 4H]
    w_rec = jnp.concatenate([wcom_ihc, params["whh"], params["wcom"]],
                            axis=1)                                # [H, 9H]

    # Packed wide buffer (lane width 13H): gate blocks on 128-lane boundaries.
    wide_top = jnp.concatenate([wih_e, w_rec], axis=1)             # [H, 13H]
    wide_bot = jnp.concatenate(
        [params["blstm"], jnp.zeros((1, 9 * H), jnp.float32)], axis=1)
    w_wide = jnp.concatenate([wide_top, wide_bot], axis=0)         # [H+1, 13H]

    # Packed narrow buffer (lane width H): w1, b1, h0, fused adv/val head.
    whead = jnp.concatenate([params["wadv"], params["wval"]], axis=1)  # [H, A+1]
    bhead = jnp.concatenate([params["badv"], params["bval"]], axis=1)  # [1, A+1]
    whead_p = jnp.pad(whead, ((0, 0), (0, H - (A + 1))))
    bhead_p = jnp.pad(bhead, ((0, 0), (0, H - (A + 1))))
    w_narrow = jnp.concatenate(
        [params["w1"], params["b1"], h0_p, whead_p, bhead_p], axis=0)  # [F+1+NP+H+1, H]

    vmem = pl.BlockSpec(memory_space=pltpu.MemorySpace.VMEM)
    q_flat = pl.pallas_call(
        functools.partial(beenet_kernel, T=T, N=N, NP=NP, F=F, H=H, A=A),
        out_shape=jax.ShapeDtypeStruct((TNP, A), jnp.float32),
        in_specs=[vmem] * 4,
        out_specs=vmem,
    )(states_flat, mask_flat, w_narrow, w_wide)

    return q_flat.reshape(T, NP, A)[:, :N, :]


# ----------------------------------------------------------------------------
# Pure-JAX reference (mirrors the PyTorch forward, general bmm chain).
# ----------------------------------------------------------------------------
def beenet_reference(states, comm_mask, params, hidden_dim):
    T, N, F = states.shape
    H = hidden_dim

    def step(carry, inp):
        ht, ct, communication = carry
        x, cm = inp
        eyes = jax.nn.relu(x @ params["w1"] + params["b1"])
        comm = communication * cm[:, :, None]
        t1 = -jnp.einsum("bij,bkj->bik", communication, comm)
        t2 = jnp.einsum("bik,bkh->bih", t1, comm)
        comm_vec = jnp.sum(t2, axis=-2)
        xt = jnp.concatenate([eyes, comm_vec], axis=-1)
        gates = xt @ params["wih"] + ht @ params["whh"] + params["blstm"]
        i_g = jax.nn.sigmoid(gates[:, 0 * H:1 * H])
        f_g = jax.nn.sigmoid(gates[:, 1 * H:2 * H])
        g_g = jnp.tanh(gates[:, 2 * H:3 * H])
        o_g = jax.nn.sigmoid(gates[:, 3 * H:4 * H])
        ct_new = f_g * ct + i_g * g_g
        ht_new = o_g * jnp.tanh(ct_new)
        com_out = ht_new @ params["wcom"]
        comm_new = jnp.broadcast_to(com_out[:, None, :], (N, N, H))
        adv = ht_new @ params["wadv"] + params["badv"]
        val = ht_new @ params["wval"] + params["bval"]
        q = val + adv - jnp.mean(adv, axis=-1, keepdims=True)
        return (ht_new, ct_new, comm_new), q

    init = (params["h0"], jnp.zeros((N, H), jnp.float32),
            jnp.zeros((N, N, H), jnp.float32))
    _, qs = lax.scan(step, init, (states, comm_mask))
    return qs


# ----------------------------------------------------------------------------
# Deterministic parameter init + run
# ----------------------------------------------------------------------------
def init_params(key, N, F, H, A):
    ks = jax.random.split(key, 12)
    nrm = lambda k, shape, fan_in: (
        jax.random.normal(k, shape, jnp.float32) / jnp.sqrt(jnp.float32(fan_in)))
    return {
        "w1": nrm(ks[0], (F, H), F),
        "b1": nrm(ks[1], (1, H), F),
        "wih": nrm(ks[2], (2 * H, 4 * H), 2 * H),
        "whh": nrm(ks[3], (H, 4 * H), H),
        "blstm": nrm(ks[4], (1, 4 * H), H),       # b_ih + b_hh folded together
        "wcom": nrm(ks[5], (H, H), H),
        "wadv": nrm(ks[6], (H, A), H),
        "badv": nrm(ks[7], (1, A), H),
        "wval": nrm(ks[8], (H, 1), H),
        "bval": nrm(ks[9], (1, 1), H),
        "h0": jax.random.normal(ks[10], (N, H), jnp.float32),
    }


if __name__ == "__main__":
    # inputdim = (N=4, 4, 4)  ->  F = 4*4*3 + 1 = 49
    N, Hdim, A, T = 4, 32, 5, 6
    F = 4 * 4 * 3 + 1
    # truncation chosen so the detach branch (l == T - trunc - 1) never matters.

    key = jax.random.PRNGKey(0)
    k_par, k_states, k_mask = jax.random.split(key, 3)
    params = init_params(k_par, N, F, Hdim, A)
    states = jax.random.normal(k_states, (T, N, F), jnp.float32)
    comm_mask = jax.random.bernoulli(k_mask, 0.5, (T, N, N)).astype(jnp.float32)

    q = beenet_forward(states, comm_mask, params, hidden_dim=Hdim, action_space=A)
    q = jax.block_until_ready(q)

    q_ref = beenet_reference(states, comm_mask, params, Hdim)
    assert q.shape == (T, N, A), q.shape
    assert jnp.all(jnp.isfinite(q))
    assert jnp.allclose(q, q_ref, rtol=5e-3, atol=5e-3), (
        float(jnp.max(jnp.abs(q - q_ref))))

    print("KERNEL_OK")
</pallas_src>

<mosaic_0001>
module attributes {stable_mosaic.version = 11 : i64} {
  func.func @beenet_kernel(%arg0: memref<48x49xf32, #tpu.memory_space<vmem>>, %arg1: memref<48x8xf32, #tpu.memory_space<vmem>>, %arg2: memref<91x32xf32, #tpu.memory_space<vmem>>, %arg3: memref<33x416xf32, #tpu.memory_space<vmem>>, %arg4: memref<48x5xf32, #tpu.memory_space<vmem>>) attributes {dimension_semantics = [], scalar_prefetch = 0 : i64, scratch_operands = 0 : i64, tpu.core_type = #tpu.core_type<tc>} {
    %c0 = arith.constant 0 : index
    %c0_0 = arith.constant 0 : index
    %0 = vector.load %arg2[%c0, %c0_0] : memref<91x32xf32, #tpu.memory_space<vmem>>, vector<49x32xf32>
    %c49 = arith.constant 49 : index
    %c0_1 = arith.constant 0 : index
    %1 = vector.load %arg2[%c49, %c0_1] : memref<91x32xf32, #tpu.memory_space<vmem>>, vector<1x32xf32>
    %c50 = arith.constant 50 : index
    %c0_2 = arith.constant 0 : index
    %2 = vector.load %arg2[%c50, %c0_2] : memref<91x32xf32, #tpu.memory_space<vmem>>, vector<8x32xf32>
    %c58 = arith.constant 58 : index
    %c0_3 = arith.constant 0 : index
    %3 = vector.load %arg2[%c58, %c0_3] : memref<91x32xf32, #tpu.memory_space<vmem>>, vector<32x32xf32>
    %c90 = arith.constant 90 : index
    %c0_4 = arith.constant 0 : index
    %4 = vector.load %arg2[%c90, %c0_4] : memref<91x32xf32, #tpu.memory_space<vmem>>, vector<1x32xf32>
    %c0_5 = arith.constant 0 : index
    %c0_6 = arith.constant 0 : index
    %5 = vector.load %arg3[%c0_5, %c0_6] : memref<33x416xf32, #tpu.memory_space<vmem>>, vector<32x128xf32>
    %c0_7 = arith.constant 0 : index
    %c128 = arith.constant 128 : index
    %6 = vector.load %arg3[%c0_7, %c128] : memref<33x416xf32, #tpu.memory_space<vmem>>, vector<32x288xf32>
    %c32 = arith.constant 32 : index
    %c0_8 = arith.constant 0 : index
    %7 = vector.load %arg3[%c32, %c0_8] : memref<33x416xf32, #tpu.memory_space<vmem>>, vector<1x128xf32>
    %c0_9 = arith.constant 0 : index
    %c0_10 = arith.constant 0 : index
    %8 = vector.load %arg0[%c0_9, %c0_10] : memref<48x49xf32, #tpu.memory_space<vmem>>, vector<48x49xf32>
    %cst = arith.constant dense<0.000000e+00> : vector<48x32xf32>
    %9 = tpu.matmul %8, %0, %cst {dimension_numbers = #tpu.dot_dimension_numbers<[1], [0], [0], [1], [0, 0, 1, 1], [], []>} : vector<48x49xf32>, vector<49x32xf32>, vector<48x32xf32> -> vector<48x32xf32>
    %10 = vector.broadcast %1 : vector<1x32xf32> to vector<48x32xf32>
    %11 = arith.addf %9, %10 : vector<48x32xf32>
    %cst_11 = arith.constant 0.000000e+00 : f32
    %12 = vector.broadcast %cst_11 : f32 to vector<48x32xf32>
    %13 = arith.maximumf %11, %12 : vector<48x32xf32>
    %cst_12 = arith.constant dense<0.000000e+00> : vector<48x128xf32>
    %14 = tpu.matmul %13, %5, %cst_12 {dimension_numbers = #tpu.dot_dimension_numbers<[1], [0], [0], [1], [0, 0, 1, 1], [], []>} : vector<48x32xf32>, vector<32x128xf32>, vector<48x128xf32> -> vector<48x128xf32>
    %15 = vector.broadcast %7 : vector<1x128xf32> to vector<48x128xf32>
    %16 = arith.addf %14, %15 : vector<48x128xf32>
    %c0_13 = arith.constant 0 : index
    %c0_14 = arith.constant 0 : index
    %17 = vector.load %arg1[%c0_13, %c0_14] : memref<48x8xf32, #tpu.memory_space<vmem>>, vector<48x8xf32>
    %18 = arith.mulf %17, %17 : vector<48x8xf32>
    %cst_15 = arith.constant dense<0.000000e+00> : vector<48xf32>
    %19 = vector.multi_reduction <add>, %18, %cst_15 [1] : vector<48x8xf32> to vector<48xf32>
    %20 = vector.shape_cast %19 : vector<48xf32> to vector<48x1xf32>
    %cst_16 = arith.constant 0.000000e+00 : f32
    %21 = vector.broadcast %cst_16 : f32 to vector<8x32xf32>
    %cst_17 = arith.constant dense<0.000000e+00> : vector<8x288xf32>
    %22 = tpu.matmul %2, %6, %cst_17 {dimension_numbers = #tpu.dot_dimension_numbers<[1], [0], [0], [1], [0, 0, 1, 1], [], []>} : vector<8x32xf32>, vector<32x288xf32>, vector<8x288xf32> -> vector<8x288xf32>
    %23 = vector.extract_strided_slice %16 {offsets = [0, 0], sizes = [8, 128], strides = [1, 1]} : vector<48x128xf32> to vector<8x128xf32>
    %24 = vector.extract_strided_slice %22 {offsets = [0, 128], sizes = [8, 128], strides = [1, 1]} : vector<8x288xf32> to vector<8x128xf32>
    %25 = arith.addf %23, %24 : vector<8x128xf32>
    %26 = arith.negf %25 : vector<8x128xf32>
    %27 = math.exp %26 : vector<8x128xf32>
    %cst_18 = arith.constant 1.000000e+00 : f32
    %28 = vector.broadcast %cst_18 : f32 to vector<8x128xf32>
    %29 = arith.addf %28, %27 : vector<8x128xf32>
    %30 = arith.divf %28, %29 : vector<8x128xf32>
    %31 = vector.extract_strided_slice %25 {offsets = [0, 64], sizes = [8, 32], strides = [1, 1]} : vector<8x128xf32> to vector<8x32xf32>
    %32 = math.tanh %31 : vector<8x32xf32>
    %33 = vector.extract_strided_slice %30 {offsets = [0, 32], sizes = [8, 32], strides = [1, 1]} : vector<8x128xf32> to vector<8x32xf32>
    %34 = arith.mulf %33, %21 : vector<8x32xf32>
    %35 = vector.extract_strided_slice %30 {offsets = [0, 0], sizes = [8, 32], strides = [1, 1]} : vector<8x128xf32> to vector<8x32xf32>
    %36 = arith.mulf %35, %32 : vector<8x32xf32>
    %37 = arith.addf %34, %36 : vector<8x32xf32>
    %38 = vector.extract_strided_slice %30 {offsets = [0, 96], sizes = [8, 32], strides = [1, 1]} : vector<8x128xf32> to vector<8x32xf32>
    %39 = math.tanh %37 : vector<8x32xf32>
    %40 = arith.mulf %38, %39 : vector<8x32xf32>
    %cst_19 = arith.constant dense<0.000000e+00> : vector<8x288xf32>
    %41 = tpu.matmul %40, %6, %cst_19 {dimension_numbers = #tpu.dot_dimension_numbers<[1], [0], [0], [1], [0, 0, 1, 1], [], []>} : vector<8x32xf32>, vector<32x288xf32>, vector<8x288xf32> -> vector<8x288xf32>
    %42 = vector.extract_strided_slice %16 {offsets = [8, 0], sizes = [8, 128], strides = [1, 1]} : vector<48x128xf32> to vector<8x128xf32>
    %43 = vector.extract_strided_slice %41 {offsets = [0, 128], sizes = [8, 128], strides = [1, 1]} : vector<8x288xf32> to vector<8x128xf32>
    %44 = arith.addf %42, %43 : vector<8x128xf32>
    %45 = vector.extract_strided_slice %41 {offsets = [0, 256], sizes = [8, 32], strides = [1, 1]} : vector<8x288xf32> to vector<8x32xf32>
    %46 = arith.mulf %45, %45 : vector<8x32xf32>
    %cst_20 = arith.constant dense<0.000000e+00> : vector<8xf32>
    %47 = vector.multi_reduction <add>, %46, %cst_20 [1] : vector<8x32xf32> to vector<8xf32>
    %48 = vector.shape_cast %47 : vector<8xf32> to vector<8x1xf32>
    %cst_21 = arith.constant -4.000000e+00 : f32
    %49 = vector.broadcast %cst_21 : f32 to vector<8x1xf32>
    %50 = arith.mulf %49, %48 : vector<8x1xf32>
    %51 = vector.extract_strided_slice %20 {offsets = [8, 0], sizes = [8, 1], strides = [1, 1]} : vector<48x1xf32> to vector<8x1xf32>
    %52 = arith.mulf %50, %51 : vector<8x1xf32>
    %53 = vector.extract_strided_slice %41 {offsets = [0, 0], sizes = [8, 128], strides = [1, 1]} : vector<8x288xf32> to vector<8x128xf32>
    %54 = vector.broadcast %52 : vector<8x1xf32> to vector<8x128xf32>
    %55 = arith.mulf %54, %53 : vector<8x128xf32>
    %56 = arith.addf %44, %55 : vector<8x128xf32>
    %57 = arith.negf %56 : vector<8x128xf32>
    %58 = math.exp %57 : vector<8x128xf32>
    %cst_22 = arith.constant 1.000000e+00 : f32
    %59 = vector.broadcast %cst_22 : f32 to vector<8x128xf32>
    %60 = arith.addf %59, %58 : vector<8x128xf32>
    %61 = arith.divf %59, %60 : vector<8x128xf32>
    %62 = vector.extract_strided_slice %56 {offsets = [0, 64], sizes = [8, 32], strides = [1, 1]} : vector<8x128xf32> to vector<8x32xf32>
    %63 = math.tanh %62 : vector<8x32xf32>
    %64 = vector.extract_strided_slice %61 {offsets = [0, 32], sizes = [8, 32], strides = [1, 1]} : vector<8x128xf32> to vector<8x32xf32>
    %65 = arith.mulf %64, %37 : vector<8x32xf32>
    %66 = vector.extract_strided_slice %61 {offsets = [0, 0], sizes = [8, 32], strides = [1, 1]} : vector<8x128xf32> to vector<8x32xf32>
    %67 = arith.mulf %66, %63 : vector<8x32xf32>
    %68 = arith.addf %65, %67 : vector<8x32xf32>
    %69 = vector.extract_strided_slice %61 {offsets = [0, 96], sizes = [8, 32], strides = [1, 1]} : vector<8x128xf32> to vector<8x32xf32>
    %70 = math.tanh %68 : vector<8x32xf32>
    %71 = arith.mulf %69, %70 : vector<8x32xf32>
    %cst_23 = arith.constant dense<0.000000e+00> : vector<8x288xf32>
    %72 = tpu.matmul %71, %6, %cst_23 {dimension_numbers = #tpu.dot_dimension_numbers<[1], [0], [0], [1], [0, 0, 1, 1], [], []>} : vector<8x32xf32>, vector<32x288xf32>, vector<8x288xf32> -> vector<8x288xf32>
    %73 = vector.extract_strided_slice %16 {offsets = [16, 0], sizes = [8, 128], strides = [1, 1]} : vector<48x128xf32> to vector<8x128xf32>
    %74 = vector.extract_strided_slice %72 {offsets = [0, 128], sizes = [8, 128], strides = [1, 1]} : vector<8x288xf32> to vector<8x128xf32>
    %75 = arith.addf %73, %74 : vector<8x128xf32>
    %76 = vector.extract_strided_slice %72 {offsets = [0, 256], sizes = [8, 32], strides = [1, 1]} : vector<8x288xf32> to vector<8x32xf32>
    %77 = arith.mulf %76, %76 : vector<8x32xf32>
    %cst_24 = arith.constant dense<0.000000e+00> : vector<8xf32>
    %78 = vector.multi_reduction <add>, %77, %cst_24 [1] : vector<8x32xf32> to vector<8xf32>
    %79 = vector.shape_cast %78 : vector<8xf32> to vector<8x1xf32>
    %cst_25 = arith.constant -4.000000e+00 : f32
    %80 = vector.broadcast %cst_25 : f32 to vector<8x1xf32>
    %81 = arith.mulf %80, %79 : vector<8x1xf32>
    %82 = vector.extract_strided_slice %20 {offsets = [16, 0], sizes = [8, 1], strides = [1, 1]} : vector<48x1xf32> to vector<8x1xf32>
    %83 = arith.mulf %81, %82 : vector<8x1xf32>
    %84 = vector.extract_strided_slice %72 {offsets = [0, 0], sizes = [8, 128], strides = [1, 1]} : vector<8x288xf32> to vector<8x128xf32>
    %85 = vector.broadcast %83 : vector<8x1xf32> to vector<8x128xf32>
    %86 = arith.mulf %85, %84 : vector<8x128xf32>
    %87 = arith.addf %75, %86 : vector<8x128xf32>
    %88 = arith.negf %87 : vector<8x128xf32>
    %89 = math.exp %88 : vector<8x128xf32>
    %cst_26 = arith.constant 1.000000e+00 : f32
    %90 = vector.broadcast %cst_26 : f32 to vector<8x128xf32>
    %91 = arith.addf %90, %89 : vector<8x128xf32>
    %92 = arith.divf %90, %91 : vector<8x128xf32>
    %93 = vector.extract_strided_slice %87 {offsets = [0, 64], sizes = [8, 32], strides = [1, 1]} : vector<8x128xf32> to vector<8x32xf32>
    %94 = math.tanh %93 : vector<8x32xf32>
    %95 = vector.extract_strided_slice %92 {offsets = [0, 32], sizes = [8, 32], strides = [1, 1]} : vector<8x128xf32> to vector<8x32xf32>
    %96 = arith.mulf %95, %68 : vector<8x32xf32>
    %97 = vector.extract_strided_slice %92 {offsets = [0, 0], sizes = [8, 32], strides = [1, 1]} : vector<8x128xf32> to vector<8x32xf32>
    %98 = arith.mulf %97, %94 : vector<8x32xf32>
    %99 = arith.addf %96, %98 : vector<8x32xf32>
    %100 = vector.extract_strided_slice %92 {offsets = [0, 96], sizes = [8, 32], strides = [1, 1]} : vector<8x128xf32> to vector<8x32xf32>
    %101 = math.tanh %99 : vector<8x32xf32>
    %102 = arith.mulf %100, %101 : vector<8x32xf32>
    %cst_27 = arith.constant dense<0.000000e+00> : vector<8x288xf32>
    %103 = tpu.matmul %102, %6, %cst_27 {dimension_numbers = #tpu.dot_dimension_numbers<[1], [0], [0], [1], [0, 0, 1, 1], [], []>} : vector<8x32xf32>, vector<32x288xf32>, vector<8x288xf32> -> vector<8x288xf32>
    %104 = vector.extract_strided_slice %16 {offsets = [24, 0], sizes = [8, 128], strides = [1, 1]} : vector<48x128xf32> to vector<8x128xf32>
    %105 = vector.extract_strided_slice %103 {offsets = [0, 128], sizes = [8, 128], strides = [1, 1]} : vector<8x288xf32> to vector<8x128xf32>
    %106 = arith.addf %104, %105 : vector<8x128xf32>
    %107 = vector.extract_strided_slice %103 {offsets = [0, 256], sizes = [8, 32], strides = [1, 1]} : vector<8x288xf32> to vector<8x32xf32>
    %108 = arith.mulf %107, %107 : vector<8x32xf32>
    %cst_28 = arith.constant dense<0.000000e+00> : vector<8xf32>
    %109 = vector.multi_reduction <add>, %108, %cst_28 [1] : vector<8x32xf32> to vector<8xf32>
    %110 = vector.shape_cast %109 : vector<8xf32> to vector<8x1xf32>
    %cst_29 = arith.constant -4.000000e+00 : f32
    %111 = vector.broadcast %cst_29 : f32 to vector<8x1xf32>
    %112 = arith.mulf %111, %110 : vector<8x1xf32>
    %113 = vector.extract_strided_slice %20 {offsets = [24, 0], sizes = [8, 1], strides = [1, 1]} : vector<48x1xf32> to vector<8x1xf32>
    %114 = arith.mulf %112, %113 : vector<8x1xf32>
    %115 = vector.extract_strided_slice %103 {offsets = [0, 0], sizes = [8, 128], strides = [1, 1]} : vector<8x288xf32> to vector<8x128xf32>
    %116 = vector.broadcast %114 : vector<8x1xf32> to vector<8x128xf32>
    %117 = arith.mulf %116, %115 : vector<8x128xf32>
    %118 = arith.addf %106, %117 : vector<8x128xf32>
    %119 = arith.negf %118 : vector<8x128xf32>
    %120 = math.exp %119 : vector<8x128xf32>
    %cst_30 = arith.constant 1.000000e+00 : f32
    %121 = vector.broadcast %cst_30 : f32 to vector<8x128xf32>
    %122 = arith.addf %121, %120 : vector<8x128xf32>
    %123 = arith.divf %121, %122 : vector<8x128xf32>
    %124 = vector.extract_strided_slice %118 {offsets = [0, 64], sizes = [8, 32], strides = [1, 1]} : vector<8x128xf32> to vector<8x32xf32>
    %125 = math.tanh %124 : vector<8x32xf32>
    %126 = vector.extract_strided_slice %123 {offsets = [0, 32], sizes = [8, 32], strides = [1, 1]} : vector<8x128xf32> to vector<8x32xf32>
    %127 = arith.mulf %126, %99 : vector<8x32xf32>
    %128 = vector.extract_strided_slice %123 {offsets = [0, 0], sizes = [8, 32], strides = [1, 1]} : vector<8x128xf32> to vector<8x32xf32>
    %129 = arith.mulf %128, %125 : vector<8x32xf32>
    %130 = arith.addf %127, %129 : vector<8x32xf32>
    %131 = vector.extract_strided_slice %123 {offsets = [0, 96], sizes = [8, 32], strides = [1, 1]} : vector<8x128xf32> to vector<8x32xf32>
    %132 = math.tanh %130 : vector<8x32xf32>
    %133 = arith.mulf %131, %132 : vector<8x32xf32>
    %cst_31 = arith.constant dense<0.000000e+00> : vector<8x288xf32>
    %134 = tpu.matmul %133, %6, %cst_31 {dimension_numbers = #tpu.dot_dimension_numbers<[1], [0], [0], [1], [0, 0, 1, 1], [], []>} : vector<8x32xf32>, vector<32x288xf32>, vector<8x288xf32> -> vector<8x288xf32>
    %135 = vector.extract_strided_slice %16 {offsets = [32, 0], sizes = [8, 128], strides = [1, 1]} : vector<48x128xf32> to vector<8x128xf32>
    %136 = vector.extract_strided_slice %134 {offsets = [0, 128], sizes = [8, 128], strides = [1, 1]} : vector<8x288xf32> to vector<8x128xf32>
    %137 = arith.addf %135, %136 : vector<8x128xf32>
    %138 = vector.extract_strided_slice %134 {offsets = [0, 256], sizes = [8, 32], strides = [1, 1]} : vector<8x288xf32> to vector<8x32xf32>
    %139 = arith.mulf %138, %138 : vector<8x32xf32>
    %cst_32 = arith.constant dense<0.000000e+00> : vector<8xf32>
    %140 = vector.multi_reduction <add>, %139, %cst_32 [1] : vector<8x32xf32> to vector<8xf32>
    %141 = vector.shape_cast %140 : vector<8xf32> to vector<8x1xf32>
    %cst_33 = arith.constant -4.000000e+00 : f32
    %142 = vector.broadcast %cst_33 : f32 to vector<8x1xf32>
    %143 = arith.mulf %142, %141 : vector<8x1xf32>
    %144 = vector.extract_strided_slice %20 {offsets = [32, 0], sizes = [8, 1], strides = [1, 1]} : vector<48x1xf32> to vector<8x1xf32>
    %145 = arith.mulf %143, %144 : vector<8x1xf32>
    %146 = vector.extract_strided_slice %134 {offsets = [0, 0], sizes = [8, 128], strides = [1, 1]} : vector<8x288xf32> to vector<8x128xf32>
    %147 = vector.broadcast %145 : vector<8x1xf32> to vector<8x128xf32>
    %148 = arith.mulf %147, %146 : vector<8x128xf32>
    %149 = arith.addf %137, %148 : vector<8x128xf32>
    %150 = arith.negf %149 : vector<8x128xf32>
    %151 = math.exp %150 : vector<8x128xf32>
    %cst_34 = arith.constant 1.000000e+00 : f32
    %152 = vector.broadcast %cst_34 : f32 to vector<8x128xf32>
    %153 = arith.addf %152, %151 : vector<8x128xf32>
    %154 = arith.divf %152, %153 : vector<8x128xf32>
    %155 = vector.extract_strided_slice %149 {offsets = [0, 64], sizes = [8, 32], strides = [1, 1]} : vector<8x128xf32> to vector<8x32xf32>
    %156 = math.tanh %155 : vector<8x32xf32>
    %157 = vector.extract_strided_slice %154 {offsets = [0, 32], sizes = [8, 32], strides = [1, 1]} : vector<8x128xf32> to vector<8x32xf32>
    %158 = arith.mulf %157, %130 : vector<8x32xf32>
    %159 = vector.extract_strided_slice %154 {offsets = [0, 0], sizes = [8, 32], strides = [1, 1]} : vector<8x128xf32> to vector<8x32xf32>
    %160 = arith.mulf %159, %156 : vector<8x32xf32>
    %161 = arith.addf %158, %160 : vector<8x32xf32>
    %162 = vector.extract_strided_slice %154 {offsets = [0, 96], sizes = [8, 32], strides = [1, 1]} : vector<8x128xf32> to vector<8x32xf32>
    %163 = math.tanh %161 : vector<8x32xf32>
    %164 = arith.mulf %162, %163 : vector<8x32xf32>
    %cst_35 = arith.constant dense<0.000000e+00> : vector<8x288xf32>
    %165 = tpu.matmul %164, %6, %cst_35 {dimension_numbers = #tpu.dot_dimension_numbers<[1], [0], [0], [1], [0, 0, 1, 1], [], []>} : vector<8x32xf32>, vector<32x288xf32>, vector<8x288xf32> -> vector<8x288xf32>
    %166 = vector.extract_strided_slice %16 {offsets = [40, 0], sizes = [8, 128], strides = [1, 1]} : vector<48x128xf32> to vector<8x128xf32>
    %167 = vector.extract_strided_slice %165 {offsets = [0, 128], sizes = [8, 128], strides = [1, 1]} : vector<8x288xf32> to vector<8x128xf32>
    %168 = arith.addf %166, %167 : vector<8x128xf32>
    %169 = vector.extract_strided_slice %165 {offsets = [0, 256], sizes = [8, 32], strides = [1, 1]} : vector<8x288xf32> to vector<8x32xf32>
    %170 = arith.mulf %169, %169 : vector<8x32xf32>
    %cst_36 = arith.constant dense<0.000000e+00> : vector<8xf32>
    %171 = vector.multi_reduction <add>, %170, %cst_36 [1] : vector<8x32xf32> to vector<8xf32>
    %172 = vector.shape_cast %171 : vector<8xf32> to vector<8x1xf32>
    %cst_37 = arith.constant -4.000000e+00 : f32
    %173 = vector.broadcast %cst_37 : f32 to vector<8x1xf32>
    %174 = arith.mulf %173, %172 : vector<8x1xf32>
    %175 = vector.extract_strided_slice %20 {offsets = [40, 0], sizes = [8, 1], strides = [1, 1]} : vector<48x1xf32> to vector<8x1xf32>
    %176 = arith.mulf %174, %175 : vector<8x1xf32>
    %177 = vector.extract_strided_slice %165 {offsets = [0, 0], sizes = [8, 128], strides = [1, 1]} : vector<8x288xf32> to vector<8x128xf32>
    %178 = vector.broadcast %176 : vector<8x1xf32> to vector<8x128xf32>
    %179 = arith.mulf %178, %177 : vector<8x128xf32>
    %180 = arith.addf %168, %179 : vector<8x128xf32>
    %181 = arith.negf %180 : vector<8x128xf32>
    %182 = math.exp %181 : vector<8x128xf32>
    %cst_38 = arith.constant 1.000000e+00 : f32
    %183 = vector.broadcast %cst_38 : f32 to vector<8x128xf32>
    %184 = arith.addf %183, %182 : vector<8x128xf32>
    %185 = arith.divf %183, %184 : vector<8x128xf32>
    %186 = vector.extract_strided_slice %180 {offsets = [0, 64], sizes = [8, 32], strides = [1, 1]} : vector<8x128xf32> to vector<8x32xf32>
    %187 = math.tanh %186 : vector<8x32xf32>
    %188 = vector.extract_strided_slice %185 {offsets = [0, 32], sizes = [8, 32], strides = [1, 1]} : vector<8x128xf32> to vector<8x32xf32>
    %189 = arith.mulf %188, %161 : vector<8x32xf32>
    %190 = vector.extract_strided_slice %185 {offsets = [0, 0], sizes = [8, 32], strides = [1, 1]} : vector<8x128xf32> to vector<8x32xf32>
    %191 = arith.mulf %190, %187 : vector<8x32xf32>
    %192 = arith.addf %189, %191 : vector<8x32xf32>
    %193 = vector.extract_strided_slice %185 {offsets = [0, 96], sizes = [8, 32], strides = [1, 1]} : vector<8x128xf32> to vector<8x32xf32>
    %194 = math.tanh %192 : vector<8x32xf32>
    %195 = arith.mulf %193, %194 : vector<8x32xf32>
    %196 = tpu.concatenate %40, %71, %102, %133, %164, %195 in 0 : vector<8x32xf32>, vector<8x32xf32>, vector<8x32xf32>, vector<8x32xf32>, vector<8x32xf32>, vector<8x32xf32> -> vector<48x32xf32>
    %cst_39 = arith.constant dense<0.000000e+00> : vector<48x32xf32>
    %197 = tpu.matmul %196, %3, %cst_39 {dimension_numbers = #tpu.dot_dimension_numbers<[1], [0], [0], [1], [0, 0, 1, 1], [], []>} : vector<48x32xf32>, vector<32x32xf32>, vector<48x32xf32> -> vector<48x32xf32>
    %198 = vector.broadcast %4 : vector<1x32xf32> to vector<48x32xf32>
    %199 = arith.addf %197, %198 : vector<48x32xf32>
    %200 = vector.extract_strided_slice %199 {offsets = [0, 0], sizes = [48, 5], strides = [1, 1]} : vector<48x32xf32> to vector<48x5xf32>
    %201 = vector.extract_strided_slice %199 {offsets = [0, 5], sizes = [48, 1], strides = [1, 1]} : vector<48x32xf32> to vector<48x1xf32>
    %202 = vector.broadcast %201 : vector<48x1xf32> to vector<48x5xf32>
    %203 = arith.addf %202, %200 : vector<48x5xf32>
    %cst_40 = arith.constant dense<0.000000e+00> : vector<48xf32>
    %204 = vector.multi_reduction <add>, %200, %cst_40 [1] : vector<48x5xf32> to vector<48xf32>
    %205 = vector.shape_cast %204 : vector<48xf32> to vector<48x1xf32>
    %cst_41 = arith.constant 5.000000e+00 : f32
    %206 = vector.broadcast %cst_41 : f32 to vector<48x1xf32>
    %207 = arith.divf %205, %206 : vector<48x1xf32>
    %208 = vector.broadcast %207 : vector<48x1xf32> to vector<48x5xf32>
    %209 = arith.subf %203, %208 : vector<48x5xf32>
    %c0_42 = arith.constant 0 : index
    %c0_43 = arith.constant 0 : index
    %210 = vector.load %arg4[%c0_42, %c0_43] : memref<48x5xf32, #tpu.memory_space<vmem>>, vector<48x5xf32>
    tpu.vector_store %arg4[%c0_42, %c0_43], %209 {strides = array<i32>} : memref<48x5xf32, #tpu.memory_space<vmem>>, vector<48x5xf32>,
    return
  }
}

</mosaic_0001>

<bundles_post_ra>
// kernel: beenet_forward.1
= control target key start
LH: loop header
LB: loop body
LE: loop exit
PB: predicated region body
PF: predicated region fallthrough
CT: control target
= control target key end

     0   :  { %vm77_vm0 = vcmask 1040384   ;;  %vm58_vm1 = vcmask 400384   ;;  %v1760_v24 = vmov 0.0   ;;  %vm182_vm2 = vcmask 261120   ;;  %s1761_s18 = smov 64   ;;  %s1762_s19 = smov 32   ;;  %s2176_s2 = inlined_call_operand.vmem [shape: f32[91,32], index: 2, kind: input, shape index: {}]   ;;  %s2177_s0 = inlined_call_operand.vmem [shape: f32[48,49], index: 0, kind: input, shape index: {}]   ;;  %s2178_s3 = inlined_call_operand.vmem [shape: f32[33,416], index: 3, kind: input, shape index: {}]   ;;  %s2179_s1 = inlined_call_operand.vmem [shape: f32[48,8], index: 1, kind: input, shape index: {}]   ;;  %s2180_s4 = inlined_call_operand.vmem [shape: f32[48,5], index: 4, kind: output, shape index: {}]  }
   0x1   :  { %v23_v0 = vld [vmem:[%s2176_s2 + $0x30] sm:$0x1]  ;;  %v22_v1 = vld [vmem:[%s2176_s2 + $0x28] sm:$0xff]  ;;  %v21_v2 = vld [vmem:[%s2176_s2 + $0x20] sm:$0xff]  ;;  %vm1763_vm3 = vmmov 0   ;;  %vm306_vm4 = vcmask 64512  }
   0x2   :  { %1593 = vmatprep.subr.msk.mxu0 %vm77_vm0, %v23_v0  ;;  %v48_v3 = vld [vmem:[%s2177_s0] sm:$0xff]  ;;  %v20_v4 = vld [vmem:[%s2176_s2 + $0x18] sm:$0xff]  ;;  %v19_v6 = vld [vmem:[%s2176_s2 + $0x10] sm:$0xff]  ;;  %vm1455_vm5 = vcmask 39936  }
   0x3   :  { %1594 = vmatpush3.msk.msra.mxu0 %vm77_vm0, %v23_v0  ;;  %1607 = vmatprep.mubr.msk.f32.mxu0 %vm58_vm1, %v48_v3  ;;  %v34_v5 = vld [vmem:[%s2178_s3 + $0x60] sm:$0xff]  ;;  %v18_v7 = vld [vmem:[%s2176_s2 + $0x8] sm:$0xff]  ;;  %v50_v10 = vld [vmem:[%s2177_s0 + $0x10] sm:$0xff] }
   0x4   :  { %1595 = vmatprep.subr.mxu0 %v22_v1  ;;  %1616 = vmatprep.subr.mxu1 %v34_v5  ;;  %v17_v8 = vld [vmem:[%s2176_s2] sm:$0xff]  ;;  %v49_v9 = vld [vmem:[%s2177_s0 + $0x8] sm:$0xff]  ;;  %v51_v11 = vld [vmem:[%s2177_s0 + $0x18] sm:$0xff] }
   0x5   :  { %1596 = vmatpush3.msra.mxu0 %v22_v1  ;;  %1617 = vmatpush3.msra.mxu1 %v34_v5  ;;  %v52_v12 = vld [vmem:[%s2177_s0 + $0x20] sm:$0xff]  ;;  %v53_v13 = vld [vmem:[%s2177_s0 + $0x28] sm:$0xff]  ;;  %v1850_v17 = vld [vmem:[%s2178_s3 + $0x70] sm:$0xff] }
   0x6   :  { %1597 = vmatprep.subr.mxu0 %v21_v2  ;;  %v33_v14 = vld [vmem:[%s2178_s3 + $0x40] sm:$0xff]  ;;  %v1857_v18 = vld [vmem:[%s2178_s3 + $0x68] sm:$0xff]  ;;  %v1863_v19 = vld [vmem:[%s2178_s3 + $0x50] sm:$0xff] }
   0x7   :  { %1598 = vmatpush3.msra.mxu0 %v21_v2  ;;  %1618 = vmatprep.subr.mxu1 %v33_v14  ;;  %v32_v15 = vld [vmem:[%s2178_s3 + $0x20] sm:$0xff]  ;;  %v1868_v20 = vld [vmem:[%s2178_s3 + $0x48] sm:$0xff]  ;;  %v1874_v21 = vld [vmem:[%s2178_s3 + $0x30] sm:$0xff] }
   0x8   :  { %1599 = vmatprep.subr.mxu0 %v20_v4  ;;  %1619 = vmatpush3.msra.mxu1 %v33_v14  ;;  %v31_v16 = vld [vmem:[%s2178_s3] sm:$0xff]  ;;  %v1880_v22 = vld [vmem:[%s2178_s3 + $0x28] sm:$0xff]  ;;  %v1886_v23 = vld [vmem:[%s2178_s3 + $0x10] sm:$0xff] }
   0x9   :  { %1600 = vmatpush3.msra.mxu0 %v20_v4  ;;  %1620 = vmatprep.subr.mxu1 %v32_v15  ;;  %v1893_v25 = vld [vmem:[%s2178_s3 + $0x8] sm:$0xff]  ;;  %v1497_v26 = vld [vmem:[%s2176_s2 + $0x31] ss:$0 sm:$0xff]  ;;  %v25_v45 = vld [vmem:[%s2176_s2 + $0x32] sm:$0xff] }
   0xa   :  { %1601 = vmatprep.subr.mxu0 %v19_v6  ;;  %1621 = vmatpush3.msra.mxu1 %v32_v15  ;;  %v47_v46 = vld [vmem:[%s2178_s3 + $0x80] ss:$0 sm:$0xff]  ;;  %v1970_v14 = vld [vmem:[%s2178_s3 + $0x38] sm:$0xff] }
   0xb   :  { %1602 = vmatpush3.msra.mxu0 %v19_v6  ;;  %1622 = vmatprep.subr.mxu1 %v31_v16  ;;  %v1977_v15 = vld [vmem:[%s2178_s3 + $0x18] sm:$0xff] }
   0xc   :  { %1603 = vmatprep.subr.mxu0 %v18_v7  ;;  %1623 = vmatpush3.msra.mxu1 %v31_v16  ;;  %v296_v16 = vld [vmem:[%s2179_s1 + $0x8] sm:$0xff] }
   0xd   :  { %1604 = vmatpush3.msra.mxu0 %v18_v7  ;;  %349 = vmatprep.subr.mxu1 %v1850_v17 }
   0xe   :  { %1605 = vmatprep.subr.mxu0 %v17_v8 }
   0xf   :  { %1606 = vmatpush3.msra.mxu0 %v17_v8 }
  0x10   :  { %1608 = vmatmul.mubr.msk.f32.vlgmr.msra.gmra.mxu0 %vm58_vm1, %v49_v9  ;;  %628 = vmatprep.subr.mxu0 %v1850_v17 }
  0x11   :  { %1610 = vmatprep.mubr.msk.f32.mxu0 %vm58_vm1, %v50_v10  ;;  %629 = vmatpush1.msra.mxu0 %v1857_v18 }
  0x12   :  { %630 = vmatprep.subr.mxu0 %v1863_v19 }
  0x13   :  { %631 = vmatpush1.msra.mxu0 %v1868_v20 }
  0x14   :  { %1611 = vmatmul.mubr.msk.f32.gmra.mxu0 %vm58_vm1, %v51_v11  ;;  %632 = vmatprep.subr.mxu0 %v1874_v21  ;;  %v1952_v11 = vld [vmem:[%s2178_s3 + $0x78] sm:$0xff] }
  0x15   :  { %1613 = vmatprep.mubr.msk.f32.mxu0 %vm58_vm1, %v52_v12  ;;  %633 = vmatpush1.msra.mxu0 %v1880_v22 }
  0x16   :  { %634 = vmatprep.subr.mxu0 %v1886_v23 }
  0x17   :  { %635 = vmatpush1.msra.mxu0 %v1893_v25 }
  0x18   :  { %1614 = vmatmul.mubr.msk.f32.gmra.mxu0 %vm58_vm1, %v53_v13  ;;  %807 = vmatprep.subr.mxu0 %v1850_v17  ;;  %v1961_v13 = vld [vmem:[%s2178_s3 + $0x58] sm:$0xff] }
  0x19   :  { %668 = vmatprep.mubr.f32.mxu0 %v1760_v24 }
  0xd0   :  { %v1609_v27 = vpop.f32.mrf.mxu0 }
  0xd1   :  { %v153_v28 = vadd.f32 %v1609_v27, %v1497_v26 }
  0xd2   :  { %v147_v29 = vpop.f32.mrf.mxu0 }
  0xd3   :  { %v148_v30 = vadd.f32 %v1497_v26, %v147_v29  ;;  %v177_v33 = vmax.f32 %v153_v28, 0.0 }
  0xd4   :  { %v1612_v31 = vpop.f32.mrf.mxu0 }
  0xd5   :  { %v176_v32 = vmax.f32 %v148_v30, 0.0  ;;  %v163_v34 = vadd.f32 %v1612_v31, %v1497_v26 }
  0xd6   :  { %v157_v35 = vpop.f32.mrf.mxu0 }
  0xd7   :  { %v158_v36 = vadd.f32 %v1497_v26, %v157_v35  ;;  %1624 = vmatprep.mubr.msk.f32.mxu1 %vm182_vm2, %v176_v32  ;;  %v179_v39 = vmax.f32 %v163_v34, 0.0 }
  0xd8   :  { %v1615_v37 = vpop.f32.mrf.mxu0  ;;  %1625 = vmatmul.mubr.msk.f32.vlgmr.msra.gmra.mxu1 %vm182_vm2, %v177_v33 }
  0xd9   :  { %v178_v38 = vmax.f32 %v158_v36, 0.0  ;;  %350 = vmatpush1.msra.mxu1 %v1857_v18  ;;  %v173_v40 = vadd.f32 %v1615_v37, %v1497_v26 }
  0xda   :  { %v167_v41 = vpop.f32.mrf.mxu0  ;;  %351 = vmatprep.subr.mxu1 %v1863_v19 }
  0xdb   :  { %v168_v42 = vadd.f32 %v1497_v26, %v167_v41  ;;  %1627 = vmatprep.mubr.msk.f32.mxu1 %vm182_vm2, %v178_v38  ;;  %352 = vmatpush1.msra.mxu1 %v1868_v20  ;;  %v181_v44 = vmax.f32 %v173_v40, 0.0  ;;  %v301_v26 = vmul.f32 %v296_v16, %v296_v16 }
  0xdc   :  { %1628 = vmatmul.mubr.msk.f32.gmra.mxu1 %vm182_vm2, %v179_v39  ;;  %353 = vmatprep.subr.mxu1 %v1874_v21 }
  0xdd   :  { %v180_v43 = vmax.f32 %v168_v42, 0.0  ;;  %354 = vmatpush1.msra.mxu1 %v1880_v22  ;;  %v307_v27 = vsel %vm306_vm4, %v301_v26, 0.0 }
  0xde   :  { %355 = vmatprep.subr.mxu1 %v1886_v23 }
  0xdf   :  { %1630 = vmatprep.mubr.msk.f32.mxu1 %vm182_vm2, %v180_v43  ;;  %356 = vmatpush1.msra.mxu1 %v1893_v25 }
  0xe0   :  { %1631 = vmatmul.mubr.msk.f32.gmra.mxu1 %vm182_vm2, %v181_v44  ;;  %449 = vmatprep.subr.mxu1 %v1850_v17 }
  0xe1   :  { %389 = vmatprep.mubr.f32.mxu1 %v1760_v24 }
  0xe4   :  { %1511 = vmatmul.mubr.msk.f32.vlgmr.msra.gmra.mxu1 %vm182_vm2, %v25_v45 }
  0xe5   :  { %450 = vmatpush1.msra.mxu1 %v1857_v18  ;;  %489 = vmatprep.mubr.f32.mxu1 %v1760_v24 }
  0xe6   :  { %451 = vmatprep.subr.mxu1 %v1863_v19 }
  0xe7   :  { %452 = vmatpush1.msra.mxu1 %v1868_v20 }
  0xe8   :  { %453 = vmatprep.subr.mxu1 %v1874_v21 }
  0xe9   :  { %454 = vmatpush1.msra.mxu1 %v1880_v22 }
  0xea   :  { %455 = vmatprep.subr.mxu1 %v1886_v23 }
  0xeb   :  { %456 = vmatpush1.msra.mxu1 %v1893_v25 }
  0xec   :  { %1633 = vmatprep.subr.mxu1 %v1760_v24 }
 0x198   :  { %v1626_v47 = vpop.f32.mrf.mxu1 }
 0x199   :  { %v1932_v48 = vadd.f32 %v1626_v47, %v47_v46 }
 0x19a   :  { %v267_v49 = vpop.f32.mrf.mxu1 }
 0x19b   :  { %v268_v59 = vadd.f32 %v267_v49, %v47_v46 }
 0x19c   :  { %v1629_v50 = vpop.f32.mrf.mxu1 }
 0x19d   :  { %v1934_v51 = vadd.f32 %v1629_v50, %v47_v46 }
 0x19e   :  { %v277_v52 = vpop.f32.mrf.mxu1 }
 0x19f   :  { %v1936_v53 = vadd.f32 %v277_v52, %v47_v46 }
 0x1a0   :  { %v1632_v54 = vpop.f32.mrf.mxu1 }
 0x1a1   :  { %v1938_v55 = vadd.f32 %v1632_v54, %v47_v46 }
 0x1a2   :  { %v287_v56 = vpop.f32.mrf.mxu1 }
 0x1a3   :  { %v1940_v57 = vadd.f32 %v287_v56, %v47_v46 }
 0x1a4   :  { %v391_v58 = vpop.f32.mrf.mxu1 }
 0x1a6   :  { %v392_v60 = vpop.f32.mrf.mxu1 }
 0x1a7   :  { %v395_v61 = vadd.f32 %v392_v60, %v268_v59  ;;  %v297_v59 = vld [vmem:[%s2179_s1 + $0x10] sm:$0xff] }
 0x1a8   :  { %v302_v60 = vmul.f32 %v297_v59, %v297_v59 }
 0x1a9   :  { %1712 = vtanh.f32 %v395_v61  ;;  %v1512_v63 = vmul.f32 -1.442695, %v395_v61 }
 0x1aa   :  { %v310_v61 = vsel %vm306_vm4, %v302_v60, 0.0 }
 0x1ab   :  { %1714 = vpow2.f32 %v1512_v63 }
 0x1b6   :  { %v1713_v62 = vpop.eup %1712 }
 0x1b7   :  { %405 = vrot.lane.b32.xlu0 %v1713_v62, %s1761_s18 }
 0x1b8   :  { %v1715_v0 = vpop.eup %1714 }
 0x1b9   :  { %v399_v1 = vadd.f32 1.0, %v1715_v0 }
 0x1bb   :  { %1716 = vrcp.f32 %v399_v1 }
 0x1c8   :  { %v1717_v2 = vpop.eup %1716 }
 0x1c9   :  { %v403_v5 = vmul.f32 0.0, %v1717_v2 }
 0x229   :  { %v406_v3 = vpop.permute.xlu0 %405 }
 0x22a   :  { %v408_v4 = vmul.f32 %v1717_v2, %v406_v3 }
 0x22c   :  { %410 = vrot.lane.b32.xlu0 %v408_v4, %s1762_s19 }
 0x29e   :  { %v411_v6 = vpop.permute.xlu0 %410 }
 0x29f   :  { %v1944_v7 = vadd.f32 %v411_v6, %v403_v5 }
 0x2a1   :  { %1718 = vtanh.f32 %v1944_v7 }
 0x2ae   :  { %v1719_v8 = vpop.eup %1718 }
 0x2af   :  { %416 = vrot.lane.b32.xlu1 %v1719_v8, %s1761_s18 }
 0x321   :  { %v417_v9 = vpop.permute.xlu1 %416 }
 0x322   :  { %v419_v10 = vmul.f32 %v1717_v2, %v417_v9 }
 0x324   :  { %421 = vrot.lane.b32.xlu1 %v419_v10, %s1762_s19 }
 0x348   :  { %308 = vadd.xlane.f32.xlu1 %v307_v27 }
 0x396   :  { %v1954_v12 = vpop.permute.xlu1 %421 }
 0x397   :  { %1513 = vmatmul.mubr.msk.f32.vlgmr.msra.gmra.mxu1 %vm182_vm2, %v1954_v12 }
 0x398   :  { %1634 = vmatpush3.msra.mxu1 %v1952_v11  ;;  %1641 = vmatprep.mubr.msk.f32.mxu1 %vm1763_vm3, %v1760_v24 }
 0x399   :  { %1635 = vmatprep.subr.mxu1 %v1760_v24 }
 0x39a   :  { %1636 = vmatpush3.msra.mxu1 %v1961_v13 }
 0x39b   :  { %1637 = vmatprep.subr.mxu1 %v1760_v24 }
 0x39c   :  { %1638 = vmatpush3.msra.mxu1 %v1970_v14 }
 0x39d   :  { %1639 = vmatprep.subr.mxu1 %v1760_v24 }
 0x39e   :  { %1640 = vmatpush3.msra.mxu1 %v1977_v15 }
 0x39f   :  { %1642 = vmatmul.mubr.msk.f32.vlgmr.msra.gmra.mxu1 %vm182_vm2, %v1954_v12  ;;  %1644 = vmatprep.subr.mxu1 %v1760_v24 }
 0x3a0   :  { %1645 = vmatpush3.msra.mxu1 %v1952_v11  ;;  %1652 = vmatprep.mubr.msk.f32.mxu1 %vm1763_vm3, %v1760_v24 }
 0x3a1   :  { %1646 = vmatprep.subr.mxu1 %v1760_v24 }
 0x3a2   :  { %1647 = vmatpush3.msra.mxu1 %v1961_v13 }
 0x3a3   :  { %1648 = vmatprep.subr.mxu1 %v1760_v24 }
 0x3a4   :  { %1649 = vmatpush3.msra.mxu1 %v1970_v14 }
 0x3a5   :  { %1650 = vmatprep.subr.mxu1 %v1760_v24 }
 0x3a6   :  { %1651 = vmatpush3.msra.mxu1 %v1977_v15 }
 0x3a7   :  { %1655 = vmatprep.subr.mxu1 %v1760_v24 }
 0x3d1   :  { %v309_v36 = vpop.xlane.xlu1 %308 }
 0x457   :  { %v491_v28 = vpop.f32.mrf.mxu1 }
 0x459   :  { %v493_v29 = vpop.f32.mrf.mxu1 }
 0x45a   :  { %v566_v30 = vadd.f32 %v493_v29, %v1932_v48 }
 0x45f   :  { %v562_v31 = vpop.f32.mrf.mxu1 }
 0x460   :  { %v567_v32 = vmul.f32 %v562_v31, %v562_v31 }
 0x461   :  { %v1643_v33 = vpop.f32.mrf.mxu1 }
 0x462   :  { %v568_v34 = vsel %vm182_vm2, %v567_v32, 0.0 }
 0x463   :  { %569 = vadd.xlane.f32.xlu0 %v568_v34 }
 0x4ec   :  { %v570_v35 = vpop.xlane.xlu0 %569 }
 0x4ed   :  { %v571_v37 = vmul.f32 -4.0, %v570_v35 }
 0x4ef   :  { %v572_v38 = vmul.f32 %v571_v37, %v309_v36 }
 0x4f1   :  { %v573_v39 = vmul.f32 %v572_v38, %v491_v28  ;;  %v298_v38 = vld [vmem:[%s2179_s1 + $0x18] sm:$0xff] }
 0x4f3   :  { %v574_v40 = vadd.f32 %v573_v39, %v566_v30  ;;  %v303_v39 = vmul.f32 %v298_v38, %v298_v38 }
 0x4f5   :  { %1720 = vtanh.f32 %v574_v40  ;;  %v1515_v42 = vmul.f32 -1.442695, %v574_v40  ;;  %v313_v40 = vsel %vm306_vm4, %v303_v39, 0.0  ;;  %v28_v39 = vld [vmem:[%s2176_s2 + $0x4a] sm:$0xff] }
 0x4f7   :  { %1722 = vpow2.f32 %v1515_v42 }
 0x502   :  { %v1721_v41 = vpop.eup %1720 }
 0x503   :  { %584 = vrot.lane.b32.xlu0 %v1721_v41, %s1761_s18 }
 0x504   :  { %v1723_v43 = vpop.eup %1722 }
 0x505   :  { %v578_v44 = vadd.f32 1.0, %v1723_v43 }
 0x507   :  { %1724 = vrcp.f32 %v578_v44 }
 0x514   :  { %v1725_v45 = vpop.eup %1724 }
 0x515   :  { %v582_v48 = vmul.f32 %v1725_v45, %v1944_v7 }
 0x575   :  { %v585_v46 = vpop.permute.xlu0 %584 }
 0x576   :  { %v587_v47 = vmul.f32 %v1725_v45, %v585_v46 }
 0x578   :  { %589 = vrot.lane.b32.xlu1 %v587_v47, %s1762_s19 }
 0x5ea   :  { %v590_v49 = vpop.permute.xlu1 %589 }
 0x5eb   :  { %v592_v50 = vadd.f32 %v590_v49, %v582_v48 }
 0x5ed   :  { %1726 = vtanh.f32 %v592_v50 }
 0x5fa   :  { %v1727_v52 = vpop.eup %1726 }
 0x5fb   :  { %595 = vrot.lane.b32.xlu0 %v1727_v52, %s1761_s18 }
 0x66d   :  { %v596_v54 = vpop.permute.xlu0 %595 }
 0x66e   :  { %v598_v56 = vmul.f32 %v1725_v45, %v596_v54 }
 0x670   :  { %600 = vrot.lane.b32.xlu1 %v598_v56, %s1762_s19 }
 0x694   :  { %311 = vadd.xlane.f32.xlu1 %v310_v61 }
 0x6e2   :  { %v2006_v58 = vpop.permute.xlu1 %600 }
 0x6e3   :  { %1516 = vmatmul.mubr.msk.f32.vlgmr.msra.gmra.mxu0 %vm182_vm2, %v2006_v58  ;;  %1653 = vmatmul.mubr.msk.f32.vlgmr.msra.gmra.mxu1 %vm182_vm2, %v2006_v58 }
 0x6e4   :  { %808 = vmatpush1.msra.mxu0 %v1857_v18  ;;  %1656 = vmatpush3.msra.mxu1 %v1952_v11 }
 0x6e5   :  { %809 = vmatprep.subr.mxu0 %v1863_v19  ;;  %1657 = vmatprep.subr.mxu1 %v1760_v24 }
 0x6e6   :  { %810 = vmatpush1.msra.mxu0 %v1868_v20  ;;  %1658 = vmatpush3.msra.mxu1 %v1961_v13 }
 0x6e7   :  { %811 = vmatprep.subr.mxu0 %v1874_v21  ;;  %1659 = vmatprep.subr.mxu1 %v1760_v24 }
 0x6e8   :  { %812 = vmatpush1.msra.mxu0 %v1880_v22  ;;  %1660 = vmatpush3.msra.mxu1 %v1970_v14 }
 0x6e9   :  { %813 = vmatprep.subr.mxu0 %v1886_v23  ;;  %1661 = vmatprep.subr.mxu1 %v1760_v24 }
 0x6ea   :  { %814 = vmatpush1.msra.mxu0 %v1893_v25  ;;  %847 = vmatprep.mubr.f32.mxu0 %v1760_v24 }
 0x6eb   :  { %1662 = vmatpush3.msra.mxu1 %v1977_v15  ;;  %1663 = vmatprep.mubr.msk.f32.mxu1 %vm1763_vm3, %v1760_v24 }
 0x6ec   :  { %986 = vmatprep.subr.mxu0 %v1850_v17  ;;  %1666 = vmatprep.subr.mxu1 %v1760_v24 }
 0x71d   :  { %v312_v4 = vpop.xlane.xlu1 %311 }
 0x7a3   :  { %v741_v62 = vpop.f32.mrf.mxu1  ;;  %v670_v2 = vpop.f32.mrf.mxu0 }
 0x7a4   :  { %v746_v63 = vmul.f32 %v741_v62, %v741_v62 }
 0x7a5   :  { %v1654_v0 = vpop.f32.mrf.mxu1  ;;  %v672_v6 = vpop.f32.mrf.mxu0 }
 0x7a6   :  { %v747_v1 = vsel %vm182_vm2, %v746_v63, 0.0  ;;  %v745_v8 = vadd.f32 %v672_v6, %v1936_v53 }
 0x7a7   :  { %748 = vadd.xlane.f32.xlu0 %v747_v1 }
 0x830   :  { %v749_v3 = vpop.xlane.xlu0 %748 }
 0x831   :  { %v750_v5 = vmul.f32 -4.0, %v749_v3 }
 0x833   :  { %v751_v7 = vmul.f32 %v750_v5, %v312_v4 }
 0x835   :  { %v752_v9 = vmul.f32 %v751_v7, %v670_v2 }
 0x837   :  { %v753_v10 = vadd.f32 %v752_v9, %v745_v8 }
 0x839   :  { %1728 = vtanh.f32 %v753_v10  ;;  %v1518_v26 = vmul.f32 -1.442695, %v753_v10 }
 0x83b   :  { %1730 = vpow2.f32 %v1518_v26 }
 0x846   :  { %v1729_v16 = vpop.eup %1728 }
 0x847   :  { %763 = vrot.lane.b32.xlu0 %v1729_v16, %s1761_s18 }
 0x848   :  { %v1731_v27 = vpop.eup %1730 }
 0x849   :  { %v757_v28 = vadd.f32 1.0, %v1731_v27 }
 0x84b   :  { %1732 = vrcp.f32 %v757_v28 }
 0x858   :  { %v1733_v29 = vpop.eup %1732 }
 0x859   :  { %v761_v32 = vmul.f32 %v1733_v29, %v592_v50 }
 0x8b9   :  { %v764_v30 = vpop.permute.xlu0 %763 }
 0x8ba   :  { %v766_v31 = vmul.f32 %v1733_v29, %v764_v30 }
 0x8bc   :  { %768 = vrot.lane.b32.xlu1 %v766_v31, %s1762_s19 }
 0x92e   :  { %v769_v33 = vpop.permute.xlu1 %768 }
 0x92f   :  { %v771_v34 = vadd.f32 %v769_v33, %v761_v32 }
 0x931   :  { %1734 = vtanh.f32 %v771_v34 }
 0x93e   :  { %v1735_v53 = vpop.eup %1734 }
 0x93f   :  { %774 = vrot.lane.b32.xlu0 %v1735_v53, %s1761_s18 }
 0x9b1   :  { %v775_v35 = vpop.permute.xlu0 %774 }
 0x9b2   :  { %v777_v36 = vmul.f32 %v1733_v29, %v775_v35 }
 0x9b4   :  { %779 = vrot.lane.b32.xlu1 %v777_v36, %s1762_s19 }
 0x9d8   :  { %314 = vadd.xlane.f32.xlu1 %v313_v40  ;;  %v27_v40 = vld [vmem:[%s2176_s2 + $0x42] sm:$0xff] }
 0xa26   :  { %v2041_v37 = vpop.permute.xlu1 %779 }
 0xa27   :  { %1519 = vmatmul.mubr.msk.f32.vlgmr.msra.gmra.mxu0 %vm182_vm2, %v2041_v37  ;;  %1664 = vmatmul.mubr.msk.f32.vlgmr.msra.gmra.mxu1 %vm182_vm2, %v2041_v37 }
 0xa28   :  { %987 = vmatpush1.msra.mxu0 %v1857_v18  ;;  %1667 = vmatpush3.msra.mxu1 %v1952_v11 }
 0xa29   :  { %988 = vmatprep.subr.mxu0 %v1863_v19  ;;  %1668 = vmatprep.subr.mxu1 %v1760_v24 }
 0xa2a   :  { %989 = vmatpush1.msra.mxu0 %v1868_v20  ;;  %1669 = vmatpush3.msra.mxu1 %v1961_v13 }
 0xa2b   :  { %990 = vmatprep.subr.mxu0 %v1874_v21  ;;  %1670 = vmatprep.subr.mxu1 %v1760_v24 }
 0xa2c   :  { %991 = vmatpush1.msra.mxu0 %v1880_v22  ;;  %1671 = vmatpush3.msra.mxu1 %v1970_v14 }
 0xa2d   :  { %992 = vmatprep.subr.mxu0 %v1886_v23  ;;  %1672 = vmatprep.subr.mxu1 %v1760_v24 }
 0xa2e   :  { %993 = vmatpush1.msra.mxu0 %v1893_v25  ;;  %1026 = vmatprep.mubr.f32.mxu0 %v1760_v24 }
 0xa2f   :  { %1673 = vmatpush3.msra.mxu1 %v1977_v15  ;;  %1674 = vmatprep.mubr.msk.f32.mxu1 %vm1763_vm3, %v1760_v24 }
 0xa30   :  { %1165 = vmatprep.subr.mxu0 %v1850_v17  ;;  %1677 = vmatprep.subr.mxu1 %v1760_v24 }
 0xa61   :  { %v315_v47 = vpop.xlane.xlu1 %314 }
 0xae7   :  { %v920_v41 = vpop.f32.mrf.mxu1  ;;  %v849_v45 = vpop.f32.mrf.mxu0 }
 0xae8   :  { %v925_v42 = vmul.f32 %v920_v41, %v920_v41  ;;  %v26_v41 = vld [vmem:[%s2176_s2 + $0x3a] sm:$0xff] }
 0xae9   :  { %v1665_v43 = vpop.f32.mrf.mxu1  ;;  %v851_v48 = vpop.f32.mrf.mxu0 }
 0xaea   :  { %v926_v44 = vsel %vm182_vm2, %v925_v42, 0.0  ;;  %v924_v50 = vadd.f32 %v851_v48, %v1934_v51 }
 0xaeb   :  { %927 = vadd.xlane.f32.xlu0 %v926_v44 }
 0xb74   :  { %v928_v46 = vpop.xlane.xlu0 %927 }
 0xb75   :  { %v929_v17 = vmul.f32 -4.0, %v928_v46 }
 0xb77   :  { %v930_v49 = vmul.f32 %v929_v17, %v315_v47 }
 0xb79   :  { %v931_v52 = vmul.f32 %v930_v49, %v849_v45 }
 0xb7b   :  { %v932_v54 = vadd.f32 %v931_v52, %v924_v50 }
 0xb7d   :  { %1736 = vtanh.f32 %v932_v54  ;;  %v1521_v59 = vmul.f32 -1.442695, %v932_v54 }
 0xb7f   :  { %1738 = vpow2.f32 %v1521_v59 }
 0xb8a   :  { %v1737_v56 = vpop.eup %1736 }
 0xb8b   :  { %942 = vrot.lane.b32.xlu0 %v1737_v56, %s1761_s18 }
 0xb8c   :  { %v1739_v60 = vpop.eup %1738 }
 0xb8d   :  { %v936_v61 = vadd.f32 1.0, %v1739_v60 }
 0xb8f   :  { %1740 = vrcp.f32 %v936_v61 }
 0xb9c   :  { %v1741_v62 = vpop.eup %1740 }
 0xb9d   :  { %v940_v1 = vmul.f32 %v1741_v62, %v771_v34 }
 0xbfd   :  { %v943_v63 = vpop.permute.xlu0 %942 }
 0xbfe   :  { %v945_v0 = vmul.f32 %v1741_v62, %v943_v63 }
 0xc00   :  { %947 = vrot.lane.b32.xlu1 %v945_v0, %s1762_s19 }
 0xc72   :  { %v948_v2 = vpop.permute.xlu1 %947 }
 0xc73   :  { %v950_v3 = vadd.f32 %v948_v2, %v940_v1 }
 0xc75   :  { %1742 = vtanh.f32 %v950_v3 }
 0xc82   :  { %v1743_v51 = vpop.eup %1742 }
 0xc83   :  { %953 = vrot.lane.b32.xlu0 %v1743_v51, %s1761_s18 }
 0xcf5   :  { %v954_v4 = vpop.permute.xlu0 %953 }
 0xcf6   :  { %v956_v5 = vmul.f32 %v1741_v62, %v954_v4 }
 0xcf8   :  { %958 = vrot.lane.b32.xlu1 %v956_v5, %s1762_s19 }
 0xd6a   :  { %v2076_v6 = vpop.permute.xlu1 %958 }
 0xd6b   :  { %1522 = vmatmul.mubr.msk.f32.vlgmr.msra.gmra.mxu0 %vm182_vm2, %v2076_v6  ;;  %1675 = vmatmul.mubr.msk.f32.vlgmr.msra.gmra.mxu1 %vm182_vm2, %v2076_v6 }
 0xd6c   :  { %1166 = vmatpush1.msra.mxu0 %v1857_v18  ;;  %1678 = vmatpush3.msra.mxu1 %v1952_v11  ;;  %v299_v18 = vld [vmem:[%s2179_s1 + $0x20] sm:$0xff] }
 0xd6d   :  { %1167 = vmatprep.subr.mxu0 %v1863_v19  ;;  %1679 = vmatprep.subr.mxu1 %v1760_v24  ;;  %v304_v19 = vmul.f32 %v299_v18, %v299_v18  ;;  %v1528_v18 = vld [vmem:[%s2176_s2 + $0x5a] ss:$0 sm:$0xff] }
 0xd6e   :  { %1168 = vmatpush1.msra.mxu0 %v1868_v20  ;;  %1680 = vmatpush3.msra.mxu1 %v1961_v13 }
 0xd6f   :  { %1169 = vmatprep.subr.mxu0 %v1874_v21  ;;  %1681 = vmatprep.subr.mxu1 %v1760_v24  ;;  %v316_v20 = vsel %vm306_vm4, %v304_v19, 0.0 }
 0xd70   :  { %1170 = vmatpush1.msra.mxu0 %v1880_v22  ;;  %1682 = vmatpush3.msra.mxu1 %v1970_v14 }
 0xd71   :  { %1171 = vmatprep.subr.mxu0 %v1886_v23  ;;  %1683 = vmatprep.subr.mxu1 %v1760_v24 }
 0xd72   :  { %1172 = vmatpush1.msra.mxu0 %v1893_v25  ;;  %1205 = vmatprep.mubr.f32.mxu0 %v1760_v24 }
 0xd73   :  { %1684 = vmatpush3.msra.mxu1 %v1977_v15  ;;  %1685 = vmatprep.mubr.msk.f32.mxu1 %vm1763_vm3, %v1760_v24 }
 0xd74   :  { %317 = vadd.xlane.f32.xlu1 %v316_v20 }
 0xdfd   :  { %v318_v14 = vpop.xlane.xlu1 %317 }
 0xe2b   :  { %v1099_v21 = vpop.f32.mrf.mxu1  ;;  %v1028_v11 = vpop.f32.mrf.mxu0 }
 0xe2c   :  { %v1104_v22 = vmul.f32 %v1099_v21, %v1099_v21 }
 0xe2d   :  { %v1676_v23 = vpop.f32.mrf.mxu1  ;;  %v1030_v7 = vpop.f32.mrf.mxu0 }
 0xe2e   :  { %v1105_v25 = vsel %vm182_vm2, %v1104_v22, 0.0  ;;  %v1103_v8 = vadd.f32 %v1030_v7, %v1940_v57  ;;  %v29_v57 = vld [vmem:[%s2176_s2 + $0x52] sm:$0xff] }
 0xe2f   :  { %1106 = vadd.xlane.f32.xlu0 %v1105_v25  ;;  %1688 = vmatprep.subr.mxu0 %v29_v57 }
 0xeb8   :  { %v1107_v13 = vpop.xlane.xlu0 %1106 }
 0xeb9   :  { %v1108_v15 = vmul.f32 -4.0, %v1107_v13  ;;  %v1764_v13 = vmov 5  }
 0xeba   :  { %1710 = vset.pattern.permute.xlu1 %v1764_v13  ;;  %1711 = vset.pattern.permute.xlu0 %v1764_v13 }
 0xebb   :  { %v1109_v24 = vmul.f32 %v1108_v15, %v318_v14 }
 0xebd   :  { %v1110_v9 = vmul.f32 %v1109_v24, %v1028_v11 }
 0xebf   :  { %v1111_v10 = vadd.f32 %v1110_v9, %v1103_v8 }
 0xec1   :  { %1744 = vtanh.f32 %v1111_v10  ;;  %v1524_v26 = vmul.f32 -1.442695, %v1111_v10 }
 0xec3   :  { %1746 = vpow2.f32 %v1524_v26 }
 0xece   :  { %v1745_v16 = vpop.eup %1744 }
 0xecf   :  { %1121 = vrot.lane.b32.xlu0 %v1745_v16, %s1761_s18 }
 0xed0   :  { %v1747_v27 = vpop.eup %1746 }
 0xed1   :  { %v1115_v28 = vadd.f32 1.0, %v1747_v27 }
 0xed3   :  { %1748 = vrcp.f32 %v1115_v28 }
 0xee0   :  { %v1749_v29 = vpop.eup %1748 }
 0xee1   :  { %v1119_v32 = vmul.f32 %v1749_v29, %v950_v3 }
 0xf41   :  { %v1122_v30 = vpop.permute.xlu0 %1121 }
 0xf42   :  { %v1124_v31 = vmul.f32 %v1749_v29, %v1122_v30 }
 0xf44   :  { %1126 = vrot.lane.b32.xlu1 %v1124_v31, %s1762_s19 }
 0xfb6   :  { %v1127_v33 = vpop.permute.xlu1 %1126 }
 0xfb7   :  { %v1129_v34 = vadd.f32 %v1127_v33, %v1119_v32 }
 0xfb9   :  { %1750 = vtanh.f32 %v1129_v34 }
 0xfc6   :  { %v1751_v53 = vpop.eup %1750 }
 0xfc7   :  { %1132 = vrot.lane.b32.xlu0 %v1751_v53, %s1761_s18 }
0x1039   :  { %v1133_v35 = vpop.permute.xlu0 %1132 }
0x103a   :  { %v1135_v36 = vmul.f32 %v1749_v29, %v1133_v35 }
0x103c   :  { %1137 = vrot.lane.b32.xlu1 %v1135_v36, %s1762_s19 }
0x10ae   :  { %v1138_v38 = vpop.permute.xlu1 %1137 }
0x10af   :  { %1525 = vmatmul.mubr.msk.f32.vlgmr.msra.gmra.mxu0 %vm182_vm2, %v1138_v38  ;;  %1686 = vmatmul.mubr.msk.f32.vlgmr.msra.gmra.mxu1 %vm182_vm2, %v1138_v38 }
0x10b0   :  { %1689 = vmatpush3.msra.mxu0 %v29_v57  ;;  %1696 = vmatprep.mubr.msk.f32.mxu0 %vm182_vm2, %v1954_v12  ;;  %v300_v12 = vld [vmem:[%s2179_s1 + $0x28] sm:$0xff] }
0x10b1   :  { %1690 = vmatprep.subr.mxu0 %v28_v39  ;;  %v305_v42 = vmul.f32 %v300_v12, %v300_v12 }
0x10b2   :  { %1691 = vmatpush3.msra.mxu0 %v28_v39 }
0x10b3   :  { %1692 = vmatprep.subr.mxu0 %v27_v40  ;;  %v319_v43 = vsel %vm306_vm4, %v305_v42, 0.0 }
0x10b4   :  { %1693 = vmatpush3.msra.mxu0 %v27_v40  ;;  %320 = vadd.xlane.f32.xlu1 %v319_v43 }
0x10b5   :  { %1694 = vmatprep.subr.mxu0 %v26_v41 }
0x10b6   :  { %1695 = vmatpush3.msra.mxu0 %v26_v41 }
0x10b7   :  { %1697 = vmatmul.mubr.msk.f32.vlgmr.msra.gmra.mxu0 %vm182_vm2, %v2006_v58 }
0x10b8   :  { %1699 = vmatprep.mubr.msk.f32.mxu0 %vm182_vm2, %v2041_v37 }
0x10bb   :  { %1700 = vmatmul.mubr.msk.f32.gmra.mxu0 %vm182_vm2, %v2076_v6 }
0x10bc   :  { %1702 = vmatprep.mubr.msk.f32.mxu0 %vm182_vm2, %v1138_v38 }
0x113d   :  { %v321_v17 = vpop.xlane.xlu1 %320 }
0x116f   :  { %v1278_v44 = vpop.f32.mrf.mxu1  ;;  %v1207_v37 = vpop.f32.mrf.mxu0 }
0x1170   :  { %v1283_v45 = vmul.f32 %v1278_v44, %v1278_v44 }
0x1171   :  { %v1687_v46 = vpop.f32.mrf.mxu1  ;;  %v1209_v49 = vpop.f32.mrf.mxu0 }
0x1172   :  { %v1284_v58 = vsel %vm182_vm2, %v1283_v45, 0.0  ;;  %v1282_v52 = vadd.f32 %v1209_v49, %v1938_v55 }
0x1173   :  { %1285 = vadd.xlane.f32.xlu0 %v1284_v58 }
0x1177   :  { %v1698_v4 = vpop.f32.mrf.mxu0 }
0x1178   :  { %v1396_v7 = vadd.f32 %v1698_v4, %v1528_v18 }
0x1179   :  { %v1390_v5 = vpop.f32.mrf.mxu0 }
0x117a   :  { %v1391_v19 = vadd.f32 %v1528_v18, %v1390_v5  ;;  %v1459_v24 = vsel %vm1455_vm5, %v1396_v7, 0.0 }
0x117b   :  { %v1701_v6 = vpop.f32.mrf.mxu0 }
0x117c   :  { %v1456_v22 = vsel %vm1455_vm5, %v1391_v19, 0.0  ;;  %v1406_v23 = vadd.f32 %v1701_v6, %v1528_v18 }
0x117d   :  { %v1400_v20 = vpop.f32.mrf.mxu0 }
0x117e   :  { %v1401_v21 = vadd.f32 %v1528_v18, %v1400_v20  ;;  %v1465_v11 = vsel %vm1455_vm5, %v1406_v23, 0.0 }
0x1180   :  { %v1462_v25 = vsel %vm1455_vm5, %v1401_v21, 0.0 }
0x11fc   :  { %v1286_v47 = vpop.xlane.xlu0 %1285 }
0x11fd   :  { %v1287_v48 = vmul.f32 -4.0, %v1286_v47 }
0x11ff   :  { %v1288_v50 = vmul.f32 %v1287_v48, %v321_v17 }
0x1201   :  { %v1289_v54 = vmul.f32 %v1288_v50, %v1207_v37 }
0x1203   :  { %v1290_v56 = vadd.f32 %v1289_v54, %v1282_v52 }
0x1205   :  { %1752 = vtanh.f32 %v1290_v56  ;;  %v1527_v60 = vmul.f32 -1.442695, %v1290_v56 }
0x1207   :  { %1754 = vpow2.f32 %v1527_v60 }
0x1212   :  { %v1753_v59 = vpop.eup %1752 }
0x1213   :  { %1300 = vrot.lane.b32.xlu0 %v1753_v59, %s1761_s18 }
0x1214   :  { %v1755_v61 = vpop.eup %1754 }
0x1215   :  { %v1294_v62 = vadd.f32 1.0, %v1755_v61 }
0x1217   :  { %1756 = vrcp.f32 %v1294_v62 }
0x1224   :  { %v1757_v63 = vpop.eup %1756 }
0x1225   :  { %v1298_v2 = vmul.f32 %v1757_v63, %v1129_v34 }
0x1285   :  { %v1301_v0 = vpop.permute.xlu0 %1300 }
0x1286   :  { %v1303_v1 = vmul.f32 %v1757_v63, %v1301_v0 }
0x1288   :  { %1305 = vrot.lane.b32.xlu1 %v1303_v1, %s1762_s19 }
0x12fa   :  { %v1306_v3 = vpop.permute.xlu1 %1305 }
0x12fb   :  { %v1308_v51 = vadd.f32 %v1306_v3, %v1298_v2 }
0x12fd   :  { %1758 = vtanh.f32 %v1308_v51 }
0x130a   :  { %v1759_v55 = vpop.eup %1758 }
0x130b   :  { %1311 = vrot.lane.b32.xlu0 %v1759_v55, %s1761_s18 }
0x132a   :  { %1457 = vadd.xlane.f32.xlu0 %v1456_v22 }
0x132e   :  { %1463 = vadd.xlane.f32.xlu0 %v1462_v25 }
0x1332   :  { %1466 = vadd.xlane.f32.xlu0 %v1465_v11 }
0x137d   :  { %v1312_v14 = vpop.permute.xlu0 %1311 }
0x137e   :  { %v1314_v15 = vmul.f32 %v1757_v63, %v1312_v14 }
0x1380   :  { %1320 = vrot.lane.b32.xlu1 %v1314_v15, %s1762_s19 }
0x13a4   :  { %1460 = vadd.xlane.f32.xlu1 %v1459_v24 }
0x13b3   :  { %v1458_v9 = vpop.xlane.xlu0 %1457 }
0x13b4   :  { %v1475_v27 = vmul.f32 0.2, %v1458_v9 }
0x13b5   :  { %1421 = vperm.xlu1 %1710, %v1391_v19  }
0x13b7   :  { %v1464_v16 = vpop.xlane.xlu0 %1463 }
0x13b8   :  { %v1477_v31 = vmul.f32 0.2, %v1464_v16 }
0x13b9   :  { %1431 = vperm.xlu1 %1710, %v1401_v21  }
0x13bb   :  { %v1467_v33 = vpop.xlane.xlu0 %1466 }
0x13bc   :  { %v1478_v53 = vmul.f32 0.2, %v1467_v33 }
0x13bd   :  { %1436 = vperm.xlu1 %1710, %v1406_v23  }
0x13f2   :  { %v1321_v8 = vpop.permute.xlu1 %1320 }
0x13f3   :  { %1703 = vmatmul.mubr.msk.f32.gmra.mxu0 %vm182_vm2, %v1321_v8 }
0x142d   :  { %v1461_v10 = vpop.xlane.xlu1 %1460 }
0x142e   :  { %v1476_v45 = vmul.f32 0.2, %v1461_v10 }
0x1431   :  { %v1422_v26 = vpop.permute.xlu1 %1421 }
0x1432   :  { %v1449_v28 = vadd.f32 %v1422_v26, %v1391_v19 }
0x1434   :  { %v1481_v29 = vsub.f32 %v1449_v28, %v1475_v27 }
0x1435   :  { %v1432_v30 = vpop.permute.xlu1 %1431 }
0x1436   :  { %1487 = vst.msk [vmem:[%s2180_s4] sm:$0xff] %vm1455_vm5, %v1481_v29  ;;  %v1451_v32 = vadd.f32 %v1432_v30, %v1401_v21 }
0x1438   :  { %v1483_v34 = vsub.f32 %v1451_v32, %v1477_v31 }
0x1439   :  { %v1437_v57 = vpop.permute.xlu1 %1436 }
0x143a   :  { %1489 = vst.msk [vmem:[%s2180_s4 + $0x10] sm:$0xff] %vm1455_vm5, %v1483_v34  ;;  %v1452_v35 = vadd.f32 %v1437_v57, %v1406_v23 }
0x143c   :  { %v1484_v36 = vsub.f32 %v1452_v35, %v1478_v53 }
0x143e   :  { %1490 = vst.msk [vmem:[%s2180_s4 + $0x18] sm:$0xff] %vm1455_vm5, %v1484_v36 }
0x14b3   :  { %v1704_v38 = vpop.f32.mrf.mxu0 }
0x14b4   :  { %v1416_v39 = vadd.f32 %v1704_v38, %v1528_v18 }
0x14b5   :  { %v1410_v40 = vpop.f32.mrf.mxu0 }
0x14b6   :  { %v1411_v41 = vadd.f32 %v1528_v18, %v1410_v40  ;;  %v1471_v12 = vsel %vm1455_vm5, %v1416_v39, 0.0 }
0x14b7   :  { %1472 = vadd.xlane.f32.xlu0 %v1471_v12 }
0x14b8   :  { %1441 = vperm.xlu1 %1710, %v1411_v41   ;;  %v1468_v42 = vsel %vm1455_vm5, %v1411_v41, 0.0 }
0x14cd   :  { %1426 = vperm.xlu0 %1711, %v1396_v7  }
0x14dc   :  { %1469 = vadd.xlane.f32.xlu1 %v1468_v42 }
0x14ed   :  { %1446 = vperm.xlu1 %1710, %v1416_v39  }
0x1533   :  { %v1442_v37 = vpop.permute.xlu1 %1441 }
0x1534   :  { %v1453_v17 = vadd.f32 %v1442_v37, %v1411_v41 }
0x1540   :  { %v1473_v43 = vpop.xlane.xlu0 %1472 }
0x1541   :  { %v1480_v52 = vmul.f32 0.2, %v1473_v43 }
0x1548   :  { %v1427_v44 = vpop.permute.xlu0 %1426 }
0x1549   :  { %v1450_v46 = vadd.f32 %v1427_v44, %v1396_v7 }
0x154b   :  { %v1482_v58 = vsub.f32 %v1450_v46, %v1476_v45 }
0x154d   :  { %1488 = vst.msk [vmem:[%s2180_s4 + $0x8] sm:$0xff] %vm1455_vm5, %v1482_v58 }
0x1565   :  { %v1470_v47 = vpop.xlane.xlu1 %1469 }
0x1566   :  { %v1479_v48 = vmul.f32 0.2, %v1470_v47 }
0x1568   :  { %v1485_v49 = vsub.f32 %v1453_v17, %v1479_v48 }
0x1569   :  { %v1447_v50 = vpop.permute.xlu1 %1446 }
0x156a   :  { %1491 = vst.msk [vmem:[%s2180_s4 + $0x20] sm:$0xff] %vm1455_vm5, %v1485_v49  ;;  %v1454_v54 = vadd.f32 %v1447_v50, %v1416_v39 }
0x156c   :  { %v1486_v56 = vsub.f32 %v1454_v54, %v1480_v52 }
0x156e   :  { %1492 = vst.msk [vmem:[%s2180_s4 + $0x28] sm:$0xff] %vm1455_vm5, %v1486_v56 }

</bundles_post_ra>
